<compile_context>
chip_gen: v7x
topology: tpu7x:2x2x1
jax: 0.10.0
libtpu: 0.0.40
codegen_flags: <defaults>
</compile_context>

<pallas_src>
import functools
import math

import jax
import jax.numpy as jnp
from jax.experimental import pallas as pl
from jax.experimental.pallas import tpu as pltpu


def _round_up(x, m):
    return (x + m - 1) // m * m


def _vmem_limit_bytes():
    # ~3/4 of physical VMEM: ~96 MiB on v5e/v6e, ~48 MiB on v7x (per review).
    try:
        cap = pltpu.get_tpu_info().vmem_capacity_bytes
        return int(min(cap * 3 // 4, 112 * 1024 * 1024))
    except Exception:
        return 64 * 1024 * 1024


def _jumprelu_kernel(base_ref, src_ref, we_b_ref, we_s_ref, be_ref, thr_ref,
                     wd_ref, bd_ref, out_ref, acc_ref):
    l_step = pl.program_id(1)

    @pl.when(l_step == 0)
    def _():
        acc_ref[...] = jnp.zeros_like(acc_ref)

    # Encoder for this latent tile: bf16 matmuls on the MXU, f32 accumulation.
    # The interchange mask is pre-folded into the two weight copies, so the
    # combined pre-activation already mixes base/source per latent column.
    pre = (jnp.dot(base_ref[...], we_b_ref[...],
                   preferred_element_type=jnp.float32)
           + jnp.dot(src_ref[...], we_s_ref[...],
                     preferred_element_type=jnp.float32)
           + be_ref[...])

    # JumpReLU: (pre > threshold) * relu(pre)  -- f32 epilogue.
    lat = jnp.where(pre > thr_ref[...], jnp.maximum(pre, 0.0), 0.0)

    # Partial decode for this latent tile, accumulated in f32 VMEM scratch.
    acc_ref[...] += jnp.dot(lat.astype(wd_ref.dtype), wd_ref[...],
                            preferred_element_type=jnp.float32)

    @pl.when(l_step == pl.num_programs(1) - 1)
    def _():
        out_ref[...] = (acc_ref[...] + bd_ref[...]).astype(out_ref.dtype)


def _build_specs(tm, tl, E_pad, n_l, single_buffer):
    def const(shape):
        if single_buffer:
            return pl.BlockSpec(shape, lambda i, l: (0, 0),
                                pipeline_mode=pl.Buffered(1))
        return pl.BlockSpec(shape, lambda i, l: (0, 0))

    def weight(shape, index_map):
        # Single-buffer the weights only when they are resident (one l step).
        if n_l == 1 and single_buffer:
            return pl.BlockSpec(shape, index_map, pipeline_mode=pl.Buffered(1))
        return pl.BlockSpec(shape, index_map)

    row_spec = pl.BlockSpec((tm, E_pad), lambda i, l: (i, 0))
    in_specs = [
        row_spec,                                        # base rows
        row_spec,                                        # source rows
        weight((E_pad, tl), lambda i, l: (0, l)),        # W_enc * (1 - mask)
        weight((E_pad, tl), lambda i, l: (0, l)),        # W_enc * mask
        weight((1, tl), lambda i, l: (0, l)),            # b_enc
        weight((1, tl), lambda i, l: (0, l)),            # threshold
        weight((tl, E_pad), lambda i, l: (l, 0)),        # W_dec
        const((1, E_pad)),                               # b_dec
    ]
    out_spec = pl.BlockSpec((tm, E_pad), lambda i, l: (i, 0))
    return in_specs, out_spec


@functools.partial(
    jax.jit, static_argnames=("tile_m", "tile_l", "single_buffer_weights"))
def _forward_impl(base, source, w_enc, b_enc, threshold, w_dec, b_dec, mask,
                  *, tile_m, tile_l, single_buffer_weights):
    out_dtype = base.dtype
    orig_shape = base.shape
    E = orig_shape[-1]
    L = w_enc.shape[1]
    N = math.prod(orig_shape[:-1])

    # Lane-dense padding: E/L to multiples of 128; rows to a multiple of tm.
    E_pad = _round_up(E, 128)
    L_pad = _round_up(L, 128)
    tm = _round_up(min(tile_m, _round_up(N, 8)), 8)
    N_pad = _round_up(N, tm)

    if tile_l is None:
        # Keep each streamed weight slab (2 masked encoder copies + decoder,
        # bf16) modest so it double-buffers comfortably in v7x's 64 MiB VMEM.
        budget = 12 * 1024 * 1024
        desired = max(128, min(L_pad, (budget // (3 * E_pad * 2)) // 128 * 128))
    else:
        desired = max(128, min(_round_up(tile_l, 128), L_pad))
    n_l = pl.cdiv(L_pad, desired)
    tl = _round_up(pl.cdiv(L_pad, n_l), 128)
    L_pad = n_l * tl

    cdt = jnp.bfloat16  # MXU operand dtype (f32 accumulation)

    base2 = jnp.pad(base.reshape(N, E),
                    ((0, N_pad - N), (0, E_pad - E))).astype(cdt)
    src2 = jnp.pad(source.reshape(N, E),
                   ((0, N_pad - N), (0, E_pad - E))).astype(cdt)

    m = mask.reshape(1, L).astype(jnp.float32)
    we = w_enc.astype(jnp.float32)
    we_b = jnp.pad(we * (1.0 - m), ((0, E_pad - E), (0, L_pad - L))).astype(cdt)
    we_s = jnp.pad(we * m, ((0, E_pad - E), (0, L_pad - L))).astype(cdt)
    wd = jnp.pad(w_dec.astype(jnp.float32),
                 ((0, L_pad - L), (0, E_pad - E))).astype(cdt)
    # Biases / threshold stay f32 for the epilogue.  Padded latent columns get
    # zero weight/bias and threshold 0, so (0 > 0) is False -> latent 0.
    be = jnp.pad(b_enc.astype(jnp.float32), (0, L_pad - L)).reshape(1, L_pad)
    thr = jnp.pad(threshold.astype(jnp.float32),
                  (0, L_pad - L)).reshape(1, L_pad)
    bd = jnp.pad(b_dec.astype(jnp.float32), (0, E_pad - E)).reshape(1, E_pad)

    in_specs, out_spec = _build_specs(tm, tl, E_pad, n_l, single_buffer_weights)
    grid = (N_pad // tm, n_l)

    out = pl.pallas_call(
        _jumprelu_kernel,
        out_shape=jax.ShapeDtypeStruct((N_pad, E_pad), out_dtype),
        grid_spec=pltpu.PrefetchScalarGridSpec(
            num_scalar_prefetch=0,
            grid=grid,
            in_specs=in_specs,
            out_specs=out_spec,
            scratch_shapes=[pltpu.VMEM((tm, E_pad), jnp.float32)],
        ),
        compiler_params=pltpu.CompilerParams(
            dimension_semantics=("parallel", "arbitrary"),
            vmem_limit_bytes=_vmem_limit_bytes(),
        ),
    )(base2, src2, we_b, we_s, be, thr, wd, bd)

    return out[:N, :E].reshape(orig_shape)


def jumprelu_sae_intervention(base, source, w_enc, b_enc, threshold, w_dec,
                              b_dec, interchange_mask, *, tile_m=256,
                              tile_l=None):
    """base/source: [..., E]; w_enc: [E, L]; b_enc/threshold: [L];
    w_dec: [L, E]; b_dec: [E]; interchange_mask: [L], 1.0 on latent dims taken
    from `source` (encodes interchange_dim / subspaces)."""
    args = (base, source, w_enc, b_enc, threshold, w_dec, b_dec,
            interchange_mask)
    try:
        return _forward_impl(*args, tile_m=tile_m, tile_l=tile_l,
                             single_buffer_weights=True)
    except Exception:
        # Fallback for JAX builds without BlockSpec(pipeline_mode=Buffered(1));
        # identical semantics, default double-buffering (costs only VMEM).
        return _forward_impl(*args, tile_m=tile_m, tile_l=tile_l,
                             single_buffer_weights=False)


def _reference(base, source, w_enc, b_enc, threshold, w_dec, b_dec,
               interchange_idx):
    """Pure-JAX port of JumpReLUAutoencoderIntervention.forward.

    Mirrors the kernel's precision (bf16 matmul operands, f32 accumulation)
    so the comparison is tight."""
    f32, bf16 = jnp.float32, jnp.bfloat16
    b = base.astype(bf16).astype(f32)
    s = source.astype(bf16).astype(f32)
    we = w_enc.astype(bf16).astype(f32)
    wd = w_dec.astype(bf16).astype(f32)
    be = b_enc.astype(f32)
    thr = threshold.astype(f32)
    bd = b_dec.astype(f32)

    def encode(x):
        pre = x @ we + be
        return jnp.where(pre > thr, jax.nn.relu(pre), 0.0)   # JumpReLU

    lat_b = encode(b)
    lat_s = encode(s)
    lat_b = lat_b.at[..., interchange_idx].set(lat_s[..., interchange_idx])
    lat_b = lat_b.astype(bf16).astype(f32)   # kernel feeds the decoder in bf16
    return (lat_b @ wd + bd).astype(base.dtype)


if __name__ == "__main__":
    # Small shapes consistent with the module: embed_dim=32, low_rank_dimension=16.
    B, S, E, L = 2, 8, 32, 16
    key = jax.random.PRNGKey(0)
    k_b, k_s, k_we, k_be, k_wd, k_bd, k_th = jax.random.split(key, 7)

    base = jax.random.normal(k_b, (B, S, E), jnp.bfloat16)
    source = jax.random.normal(k_s, (B, S, E), jnp.bfloat16)

    def linear_init(k, fan_in, shape):
        bound = 1.0 / (fan_in ** 0.5)
        return jax.random.uniform(k, shape, jnp.float32, -bound, bound)

    # (The torch module zero-initializes; random values make the check meaningful.)
    w_enc = linear_init(k_we, E, (E, L))        # (embed_dim, low_rank_dimension)
    b_enc = linear_init(k_be, E, (L,))
    w_dec = linear_init(k_wd, L, (L, E))        # (low_rank_dimension, embed_dim)
    b_dec = linear_init(k_bd, L, (E,))
    threshold = jax.random.uniform(k_th, (L,), jnp.float32, 0.0, 0.1)

    # interchange_dim = L // 2: take the first half of the latent dims from source.
    interchange_idx = jnp.arange(L // 2)
    mask = jnp.zeros((L,), jnp.float32).at[interchange_idx].set(1.0)

    out = jumprelu_sae_intervention(base, source, w_enc, b_enc, threshold,
                                    w_dec, b_dec, mask)
    out = jax.block_until_ready(out)

    ref = _reference(base, source, w_enc, b_enc, threshold, w_dec, b_dec,
                     interchange_idx)
    assert out.shape == (B, S, E) and out.dtype == base.dtype
    err = jnp.max(jnp.abs(out.astype(jnp.float32) - ref.astype(jnp.float32)))
    assert float(err) < 3e-2, f"mismatch vs reference: {float(err)}"

    print("KERNEL_OK")
</pallas_src>

<mosaic_0001>
module attributes {stable_mosaic.version = 11 : i64} {
  func.func @_jumprelu_kernel(%arg0: i32, %arg1: i32, %arg2: memref<16x128xbf16, #tpu.memory_space<vmem>>, %arg3: memref<16x128xbf16, #tpu.memory_space<vmem>>, %arg4: memref<128x128xbf16, #tpu.memory_space<vmem>>, %arg5: memref<128x128xbf16, #tpu.memory_space<vmem>>, %arg6: memref<1x128xf32, #tpu.memory_space<vmem>>, %arg7: memref<1x128xf32, #tpu.memory_space<vmem>>, %arg8: memref<128x128xbf16, #tpu.memory_space<vmem>>, %arg9: memref<1x128xf32, #tpu.memory_space<vmem>>, %arg10: memref<16x128xbf16, #tpu.memory_space<vmem>>, %arg11: memref<16x128xf32, #tpu.memory_space<vmem>>) attributes {dimension_semantics = [#tpu.dimension_semantics<parallel>, #tpu.dimension_semantics<arbitrary>], iteration_bounds = array<i64: 1, 1>, scalar_prefetch = 0 : i64, scratch_operands = 1 : i64, tpu.core_type = #tpu.core_type<tc>, window_params = [{transform_indices = @transform_0, window_bounds = array<i64: 16, 128>}, {transform_indices = @transform_1, window_bounds = array<i64: 16, 128>}, {pipeline_mode = #tpu.pipeline_mode<synchronous>, transform_indices = @transform_2, window_bounds = array<i64: 128, 128>}, {pipeline_mode = #tpu.pipeline_mode<synchronous>, transform_indices = @transform_3, window_bounds = array<i64: 128, 128>}, {pipeline_mode = #tpu.pipeline_mode<synchronous>, transform_indices = @transform_4, window_bounds = array<i64: 1, 128>}, {pipeline_mode = #tpu.pipeline_mode<synchronous>, transform_indices = @transform_5, window_bounds = array<i64: 1, 128>}, {pipeline_mode = #tpu.pipeline_mode<synchronous>, transform_indices = @transform_6, window_bounds = array<i64: 128, 128>}, {pipeline_mode = #tpu.pipeline_mode<synchronous>, transform_indices = @transform_7, window_bounds = array<i64: 1, 128>}, {transform_indices = @transform_8, window_bounds = array<i64: 16, 128>}]} {
    %c0_i32 = arith.constant 0 : i32
    %0 = arith.cmpi eq, %arg1, %c0_i32 : i32
    %1 = arith.extui %0 : i1 to i32
    %c0_i32_0 = arith.constant 0 : i32
    %2 = arith.cmpi ne, %1, %c0_i32_0 : i32
    scf.if %2 {
      %cst_24 = arith.constant 0.000000e+00 : f32
      %29 = vector.broadcast %cst_24 : f32 to vector<16x128xf32>
      %c0_25 = arith.constant 0 : index
      %c0_26 = arith.constant 0 : index
      %30 = vector.load %arg11[%c0_25, %c0_26] : memref<16x128xf32, #tpu.memory_space<vmem>>, vector<16x128xf32>
      tpu.vector_store %arg11[%c0_25, %c0_26], %29 {strides = array<i32>} : memref<16x128xf32, #tpu.memory_space<vmem>>, vector<16x128xf32>,
    } else {
    }
    %c0 = arith.constant 0 : index
    %c0_1 = arith.constant 0 : index
    %3 = vector.load %arg2[%c0, %c0_1] : memref<16x128xbf16, #tpu.memory_space<vmem>>, vector<16x128xbf16>
    %c0_2 = arith.constant 0 : index
    %c0_3 = arith.constant 0 : index
    %4 = vector.load %arg4[%c0_2, %c0_3] : memref<128x128xbf16, #tpu.memory_space<vmem>>, vector<128x128xbf16>
    %cst = arith.constant dense<0.000000e+00> : vector<16x128xf32>
    %5 = tpu.matmul %3, %4, %cst {dimension_numbers = #tpu.dot_dimension_numbers<[1], [0], [0], [1], [0, 0, 1, 1], [], []>} : vector<16x128xbf16>, vector<128x128xbf16>, vector<16x128xf32> -> vector<16x128xf32>
    %c0_4 = arith.constant 0 : index
    %c0_5 = arith.constant 0 : index
    %6 = vector.load %arg3[%c0_4, %c0_5] : memref<16x128xbf16, #tpu.memory_space<vmem>>, vector<16x128xbf16>
    %c0_6 = arith.constant 0 : index
    %c0_7 = arith.constant 0 : index
    %7 = vector.load %arg5[%c0_6, %c0_7] : memref<128x128xbf16, #tpu.memory_space<vmem>>, vector<128x128xbf16>
    %cst_8 = arith.constant dense<0.000000e+00> : vector<16x128xf32>
    %8 = tpu.matmul %6, %7, %cst_8 {dimension_numbers = #tpu.dot_dimension_numbers<[1], [0], [0], [1], [0, 0, 1, 1], [], []>} : vector<16x128xbf16>, vector<128x128xbf16>, vector<16x128xf32> -> vector<16x128xf32>
    %9 = arith.addf %5, %8 : vector<16x128xf32>
    %c0_9 = arith.constant 0 : index
    %c0_10 = arith.constant 0 : index
    %10 = vector.load %arg6[%c0_9, %c0_10] : memref<1x128xf32, #tpu.memory_space<vmem>>, vector<1x128xf32>
    %11 = vector.broadcast %10 : vector<1x128xf32> to vector<16x128xf32>
    %12 = arith.addf %9, %11 : vector<16x128xf32>
    %c0_11 = arith.constant 0 : index
    %c0_12 = arith.constant 0 : index
    %13 = vector.load %arg7[%c0_11, %c0_12] : memref<1x128xf32, #tpu.memory_space<vmem>>, vector<1x128xf32>
    %14 = vector.broadcast %13 : vector<1x128xf32> to vector<16x128xf32>
    %15 = arith.cmpf ogt, %12, %14 : vector<16x128xf32>
    %cst_13 = arith.constant 0.000000e+00 : f32
    %16 = vector.broadcast %cst_13 : f32 to vector<16x128xf32>
    %17 = arith.maximumf %12, %16 : vector<16x128xf32>
    %cst_14 = arith.constant 0.000000e+00 : f32
    %18 = vector.broadcast %cst_14 : f32 to vector<16x128xf32>
    %19 = arith.select %15, %17, %18 : vector<16x128xi1>, vector<16x128xf32>
    %c0_15 = arith.constant 0 : index
    %c0_16 = arith.constant 0 : index
    %20 = vector.load %arg11[%c0_15, %c0_16] : memref<16x128xf32, #tpu.memory_space<vmem>>, vector<16x128xf32>
    %21 = arith.truncf %19 : vector<16x128xf32> to vector<16x128xbf16>
    %c0_17 = arith.constant 0 : index
    %c0_18 = arith.constant 0 : index
    %22 = vector.load %arg8[%c0_17, %c0_18] : memref<128x128xbf16, #tpu.memory_space<vmem>>, vector<128x128xbf16>
    %cst_19 = arith.constant dense<0.000000e+00> : vector<16x128xf32>
    %23 = tpu.matmul %21, %22, %cst_19 {dimension_numbers = #tpu.dot_dimension_numbers<[1], [0], [0], [1], [0, 0, 1, 1], [], []>} : vector<16x128xbf16>, vector<128x128xbf16>, vector<16x128xf32> -> vector<16x128xf32>
    %24 = arith.addf %20, %23 : vector<16x128xf32>
    %c0_20 = arith.constant 0 : index
    %c0_21 = arith.constant 0 : index
    %25 = vector.load %arg11[%c0_20, %c0_21] : memref<16x128xf32, #tpu.memory_space<vmem>>, vector<16x128xf32>
    tpu.vector_store %arg11[%c0_20, %c0_21], %24 {strides = array<i32>} : memref<16x128xf32, #tpu.memory_space<vmem>>, vector<16x128xf32>,
    %c0_i32_22 = arith.constant 0 : i32
    %26 = arith.cmpi eq, %arg1, %c0_i32_22 : i32
    %27 = arith.extui %26 : i1 to i32
    %c0_i32_23 = arith.constant 0 : i32
    %28 = arith.cmpi ne, %27, %c0_i32_23 : i32
    scf.if %28 {
      %c0_24 = arith.constant 0 : index
      %c0_25 = arith.constant 0 : index
      %29 = vector.load %arg11[%c0_24, %c0_25] : memref<16x128xf32, #tpu.memory_space<vmem>>, vector<16x128xf32>
      %c0_26 = arith.constant 0 : index
      %c0_27 = arith.constant 0 : index
      %30 = vector.load %arg9[%c0_26, %c0_27] : memref<1x128xf32, #tpu.memory_space<vmem>>, vector<1x128xf32>
      %31 = vector.broadcast %30 : vector<1x128xf32> to vector<16x128xf32>
      %32 = arith.addf %29, %31 : vector<16x128xf32>
      %33 = arith.truncf %32 : vector<16x128xf32> to vector<16x128xbf16>
      %c0_28 = arith.constant 0 : index
      %c0_29 = arith.constant 0 : index
      %34 = vector.load %arg10[%c0_28, %c0_29] : memref<16x128xbf16, #tpu.memory_space<vmem>>, vector<16x128xbf16>
      tpu.vector_store %arg10[%c0_28, %c0_29], %33 {strides = array<i32>} : memref<16x128xbf16, #tpu.memory_space<vmem>>, vector<16x128xbf16>,
    } else {
    }
    return
  }
  func.func @transform_0(%arg0: i32, %arg1: i32) -> (i32, i32) {
    %c0_i32 = arith.constant 0 : i32
    %c0_i32_0 = arith.constant 0 : i32
    return %arg0, %c0_i32 : i32, i32
  }
  func.func @transform_1(%arg0: i32, %arg1: i32) -> (i32, i32) {
    %c0_i32 = arith.constant 0 : i32
    %c0_i32_0 = arith.constant 0 : i32
    return %arg0, %c0_i32 : i32, i32
  }
  func.func @transform_2(%arg0: i32, %arg1: i32) -> (i32, i32) {
    %c0_i32 = arith.constant 0 : i32
    %c0_i32_0 = arith.constant 0 : i32
    return %c0_i32, %arg1 : i32, i32
  }
  func.func @transform_3(%arg0: i32, %arg1: i32) -> (i32, i32) {
    %c0_i32 = arith.constant 0 : i32
    %c0_i32_0 = arith.constant 0 : i32
    return %c0_i32, %arg1 : i32, i32
  }
  func.func @transform_4(%arg0: i32, %arg1: i32) -> (i32, i32) {
    %c0_i32 = arith.constant 0 : i32
    %c0_i32_0 = arith.constant 0 : i32
    return %c0_i32, %arg1 : i32, i32
  }
  func.func @transform_5(%arg0: i32, %arg1: i32) -> (i32, i32) {
    %c0_i32 = arith.constant 0 : i32
    %c0_i32_0 = arith.constant 0 : i32
    return %c0_i32, %arg1 : i32, i32
  }
  func.func @transform_6(%arg0: i32, %arg1: i32) -> (i32, i32) {
    %c0_i32 = arith.constant 0 : i32
    %c0_i32_0 = arith.constant 0 : i32
    return %arg1, %c0_i32 : i32, i32
  }
  func.func @transform_7(%arg0: i32, %arg1: i32) -> (i32, i32) {
    %c0_i32 = arith.constant 0 : i32
    %c0_i32_0 = arith.constant 0 : i32
    %c0_i32_1 = arith.constant 0 : i32
    return %c0_i32, %c0_i32_0 : i32, i32
  }
  func.func @transform_8(%arg0: i32, %arg1: i32) -> (i32, i32) {
    %c0_i32 = arith.constant 0 : i32
    %c0_i32_0 = arith.constant 0 : i32
    return %arg0, %c0_i32 : i32, i32
  }
}

module attributes {stable_mosaic.version = 11 : i64} {
  func.func @_jumprelu_kernel(%arg0: i32, %arg1: i32, %arg2: memref<16x128xbf16, #tpu.memory_space<vmem>>, %arg3: memref<16x128xbf16, #tpu.memory_space<vmem>>, %arg4: memref<128x128xbf16, #tpu.memory_space<vmem>>, %arg5: memref<128x128xbf16, #tpu.memory_space<vmem>>, %arg6: memref<1x128xf32, #tpu.memory_space<vmem>>, %arg7: memref<1x128xf32, #tpu.memory_space<vmem>>, %arg8: memref<128x128xbf16, #tpu.memory_space<vmem>>, %arg9: memref<1x128xf32, #tpu.memory_space<vmem>>, %arg10: memref<16x128xbf16, #tpu.memory_space<vmem>>, %arg11: memref<16x128xf32, #tpu.memory_space<vmem>>) attributes {dimension_semantics = [#tpu.dimension_semantics<parallel>, #tpu.dimension_semantics<arbitrary>], iteration_bounds = array<i64: 1, 1>, scalar_prefetch = 0 : i64, scratch_operands = 1 : i64, tpu.core_type = #tpu.core_type<tc>, window_params = [{transform_indices = @transform_0, window_bounds = array<i64: 16, 128>}, {transform_indices = @transform_1, window_bounds = array<i64: 16, 128>}, {transform_indices = @transform_2, window_bounds = array<i64: 128, 128>}, {transform_indices = @transform_3, window_bounds = array<i64: 128, 128>}, {transform_indices = @transform_4, window_bounds = array<i64: 1, 128>}, {transform_indices = @transform_5, window_bounds = array<i64: 1, 128>}, {transform_indices = @transform_6, window_bounds = array<i64: 128, 128>}, {pipeline_mode = #tpu.pipeline_mode<synchronous>, transform_indices = @transform_7, window_bounds = array<i64: 1, 128>}, {transform_indices = @transform_8, window_bounds = array<i64: 16, 128>}]} {
    %c0_i32 = arith.constant 0 : i32
    %0 = arith.cmpi eq, %arg1, %c0_i32 : i32
    %1 = arith.extui %0 : i1 to i32
    %c0_i32_0 = arith.constant 0 : i32
    %2 = arith.cmpi ne, %1, %c0_i32_0 : i32
    scf.if %2 {
      %cst_24 = arith.constant 0.000000e+00 : f32
      %29 = vector.broadcast %cst_24 : f32 to vector<16x128xf32>
      %c0_25 = arith.constant 0 : index
      %c0_26 = arith.constant 0 : index
      %30 = vector.load %arg11[%c0_25, %c0_26] : memref<16x128xf32, #tpu.memory_space<vmem>>, vector<16x128xf32>
      tpu.vector_store %arg11[%c0_25, %c0_26], %29 {strides = array<i32>} : memref<16x128xf32, #tpu.memory_space<vmem>>, vector<16x128xf32>,
    } else {
    }
    %c0 = arith.constant 0 : index
    %c0_1 = arith.constant 0 : index
    %3 = vector.load %arg2[%c0, %c0_1] : memref<16x128xbf16, #tpu.memory_space<vmem>>, vector<16x128xbf16>
    %c0_2 = arith.constant 0 : index
    %c0_3 = arith.constant 0 : index
    %4 = vector.load %arg4[%c0_2, %c0_3] : memref<128x128xbf16, #tpu.memory_space<vmem>>, vector<128x128xbf16>
    %cst = arith.constant dense<0.000000e+00> : vector<16x128xf32>
    %5 = tpu.matmul %3, %4, %cst {dimension_numbers = #tpu.dot_dimension_numbers<[1], [0], [0], [1], [0, 0, 1, 1], [], []>} : vector<16x128xbf16>, vector<128x128xbf16>, vector<16x128xf32> -> vector<16x128xf32>
    %c0_4 = arith.constant 0 : index
    %c0_5 = arith.constant 0 : index
    %6 = vector.load %arg3[%c0_4, %c0_5] : memref<16x128xbf16, #tpu.memory_space<vmem>>, vector<16x128xbf16>
    %c0_6 = arith.constant 0 : index
    %c0_7 = arith.constant 0 : index
    %7 = vector.load %arg5[%c0_6, %c0_7] : memref<128x128xbf16, #tpu.memory_space<vmem>>, vector<128x128xbf16>
    %cst_8 = arith.constant dense<0.000000e+00> : vector<16x128xf32>
    %8 = tpu.matmul %6, %7, %cst_8 {dimension_numbers = #tpu.dot_dimension_numbers<[1], [0], [0], [1], [0, 0, 1, 1], [], []>} : vector<16x128xbf16>, vector<128x128xbf16>, vector<16x128xf32> -> vector<16x128xf32>
    %9 = arith.addf %5, %8 : vector<16x128xf32>
    %c0_9 = arith.constant 0 : index
    %c0_10 = arith.constant 0 : index
    %10 = vector.load %arg6[%c0_9, %c0_10] : memref<1x128xf32, #tpu.memory_space<vmem>>, vector<1x128xf32>
    %11 = vector.broadcast %10 : vector<1x128xf32> to vector<16x128xf32>
    %12 = arith.addf %9, %11 : vector<16x128xf32>
    %c0_11 = arith.constant 0 : index
    %c0_12 = arith.constant 0 : index
    %13 = vector.load %arg7[%c0_11, %c0_12] : memref<1x128xf32, #tpu.memory_space<vmem>>, vector<1x128xf32>
    %14 = vector.broadcast %13 : vector<1x128xf32> to vector<16x128xf32>
    %15 = arith.cmpf ogt, %12, %14 : vector<16x128xf32>
    %cst_13 = arith.constant 0.000000e+00 : f32
    %16 = vector.broadcast %cst_13 : f32 to vector<16x128xf32>
    %17 = arith.maximumf %12, %16 : vector<16x128xf32>
    %cst_14 = arith.constant 0.000000e+00 : f32
    %18 = vector.broadcast %cst_14 : f32 to vector<16x128xf32>
    %19 = arith.select %15, %17, %18 : vector<16x128xi1>, vector<16x128xf32>
    %c0_15 = arith.constant 0 : index
    %c0_16 = arith.constant 0 : index
    %20 = vector.load %arg11[%c0_15, %c0_16] : memref<16x128xf32, #tpu.memory_space<vmem>>, vector<16x128xf32>
    %21 = arith.truncf %19 : vector<16x128xf32> to vector<16x128xbf16>
    %c0_17 = arith.constant 0 : index
    %c0_18 = arith.constant 0 : index
    %22 = vector.load %arg8[%c0_17, %c0_18] : memref<128x128xbf16, #tpu.memory_space<vmem>>, vector<128x128xbf16>
    %cst_19 = arith.constant dense<0.000000e+00> : vector<16x128xf32>
    %23 = tpu.matmul %21, %22, %cst_19 {dimension_numbers = #tpu.dot_dimension_numbers<[1], [0], [0], [1], [0, 0, 1, 1], [], []>} : vector<16x128xbf16>, vector<128x128xbf16>, vector<16x128xf32> -> vector<16x128xf32>
    %24 = arith.addf %20, %23 : vector<16x128xf32>
    %c0_20 = arith.constant 0 : index
    %c0_21 = arith.constant 0 : index
    %25 = vector.load %arg11[%c0_20, %c0_21] : memref<16x128xf32, #tpu.memory_space<vmem>>, vector<16x128xf32>
    tpu.vector_store %arg11[%c0_20, %c0_21], %24 {strides = array<i32>} : memref<16x128xf32, #tpu.memory_space<vmem>>, vector<16x128xf32>,
    %c0_i32_22 = arith.constant 0 : i32
    %26 = arith.cmpi eq, %arg1, %c0_i32_22 : i32
    %27 = arith.extui %26 : i1 to i32
    %c0_i32_23 = arith.constant 0 : i32
    %28 = arith.cmpi ne, %27, %c0_i32_23 : i32
    scf.if %28 {
      %c0_24 = arith.constant 0 : index
      %c0_25 = arith.constant 0 : index
      %29 = vector.load %arg11[%c0_24, %c0_25] : memref<16x128xf32, #tpu.memory_space<vmem>>, vector<16x128xf32>
      %c0_26 = arith.constant 0 : index
      %c0_27 = arith.constant 0 : index
      %30 = vector.load %arg9[%c0_26, %c0_27] : memref<1x128xf32, #tpu.memory_space<vmem>>, vector<1x128xf32>
      %31 = vector.broadcast %30 : vector<1x128xf32> to vector<16x128xf32>
      %32 = arith.addf %29, %31 : vector<16x128xf32>
      %33 = arith.truncf %32 : vector<16x128xf32> to vector<16x128xbf16>
      %c0_28 = arith.constant 0 : index
      %c0_29 = arith.constant 0 : index
      %34 = vector.load %arg10[%c0_28, %c0_29] : memref<16x128xbf16, #tpu.memory_space<vmem>>, vector<16x128xbf16>
      tpu.vector_store %arg10[%c0_28, %c0_29], %33 {strides = array<i32>} : memref<16x128xbf16, #tpu.memory_space<vmem>>, vector<16x128xbf16>,
    } else {
    }
    return
  }
  func.func @transform_0(%arg0: i32, %arg1: i32) -> (i32, i32) {
    %c0_i32 = arith.constant 0 : i32
    %c0_i32_0 = arith.constant 0 : i32
    return %arg0, %c0_i32 : i32, i32
  }
  func.func @transform_1(%arg0: i32, %arg1: i32) -> (i32, i32) {
    %c0_i32 = arith.constant 0 : i32
    %c0_i32_0 = arith.constant 0 : i32
    return %arg0, %c0_i32 : i32, i32
  }
  func.func @transform_2(%arg0: i32, %arg1: i32) -> (i32, i32) {
    %c0_i32 = arith.constant 0 : i32
    %c0_i32_0 = arith.constant 0 : i32
    return %c0_i32, %arg1 : i32, i32
  }
  func.func @transform_3(%arg0: i32, %arg1: i32) -> (i32, i32) {
    %c0_i32 = arith.constant 0 : i32
    %c0_i32_0 = arith.constant 0 : i32
    return %c0_i32, %arg1 : i32, i32
  }
  func.func @transform_4(%arg0: i32, %arg1: i32) -> (i32, i32) {
    %c0_i32 = arith.constant 0 : i32
    %c0_i32_0 = arith.constant 0 : i32
    return %c0_i32, %arg1 : i32, i32
  }
  func.func @transform_5(%arg0: i32, %arg1: i32) -> (i32, i32) {
    %c0_i32 = arith.constant 0 : i32
    %c0_i32_0 = arith.constant 0 : i32
    return %c0_i32, %arg1 : i32, i32
  }
  func.func @transform_6(%arg0: i32, %arg1: i32) -> (i32, i32) {
    %c0_i32 = arith.constant 0 : i32
    %c0_i32_0 = arith.constant 0 : i32
    return %arg1, %c0_i32 : i32, i32
  }
  func.func @transform_7(%arg0: i32, %arg1: i32) -> (i32, i32) {
    %c0_i32 = arith.constant 0 : i32
    %c0_i32_0 = arith.constant 0 : i32
    %c0_i32_1 = arith.constant 0 : i32
    return %c0_i32, %c0_i32_0 : i32, i32
  }
  func.func @transform_8(%arg0: i32, %arg1: i32) -> (i32, i32) {
    %c0_i32 = arith.constant 0 : i32
    %c0_i32_0 = arith.constant 0 : i32
    return %arg0, %c0_i32 : i32, i32
  }
}

</mosaic_0001>

<bundles_post_ra>
// kernel: _forward_impl.1
= control target key start
LH: loop header
LB: loop body
LE: loop exit
PB: predicated region body
PF: predicated region fallthrough
CT: control target
= control target key end

     0   :  { %13 = vsyncpa [#allocation4], 0  ;;  %s1150_s0 = inlined_call_operand.hbm [shape: bf16[16,128], index: 0, kind: input, shape index: {}]   ;;  %s1151_s1 = inlined_call_operand.hbm [shape: bf16[16,128], index: 1, kind: input, shape index: {}]   ;;  %s1152_s2 = inlined_call_operand.hbm [shape: bf16[128,128], index: 2, kind: input, shape index: {}]   ;;  %s1153_s3 = inlined_call_operand.hbm [shape: bf16[128,128], index: 3, kind: input, shape index: {}]   ;;  %s1154_s4 = inlined_call_operand.hbm [shape: f32[1,128], index: 4, kind: input, shape index: {}]   ;;  %s1155_s5 = inlined_call_operand.hbm [shape: f32[1,128], index: 5, kind: input, shape index: {}]   ;;  %s1156_s6 = inlined_call_operand.hbm [shape: bf16[128,128], index: 6, kind: input, shape index: {}]   ;;  %s1157_s7 = inlined_call_operand.hbm [shape: f32[1,128], index: 7, kind: input, shape index: {}]   ;;  %s1158_s8 = inlined_call_operand.hbm [shape: bf16[16,128], index: 8, kind: output, shape index: {}]  }
   0x1   :  { %14 = vsyncpa [#allocation7], 0 }
   0x2   :  { %15 = vsyncpa [#allocation10], 0 }
   0x3   :  { %16 = vsyncpa [#allocation13], 0 }
   0x4   :  { %17 = vsyncpa [#allocation16], 0 }
   0x5   :  { %18 = vsyncpa [#allocation5], 0  ;;  %s922_s27 = smov [#allocation6]   ;;  %s923_s29 = smov [#allocation9]  }
   0x6   :  { %s36_s28 = sshll.u32 %s922_s27, 4  ;;  %s60_s30 = sshll.u32 %s923_s29, 4  ;;  %s37_s28 = int_to_ptr.vmem [resolvable:$true] %s36_s28  ;;  %s980_s30 = int_to_ptr.vmem [resolvable:$true] %s60_s30 }
   0x7   :  { %s712_s11 = scalar_lea.hbm %s1151_s1, 128 }
   0x8   :  { %p713_p0 = scmp.ne.s32.totalorder %s1151_s1, %s712_s11  ;;  %p716_p1 = scmp.lt.u32.totalorder %s712_s11, %s1151_s1 }
   0xa   :  { %p718_p2 = pnand %p716_p1, %p713_p0 }
   0xc   :  { %721 = shalt.err (!%p718_p2)
}
   0xd   :  { %s722_s16 = scalar_lea.vmem %s37_s28, 128  ;;  %p727_p4 = scmp.lt.s32.totalorder %s37_s28, %s37_s28 }
   0xe   :  { %p723_p3 = scmp.ne.s32.totalorder %s37_s28, %s722_s16  ;;  %p728_p5 = scmp.lt.s32.totalorder %s722_s16, %s722_s16 }
  0x10   :  { %p729_p6 = por %p728_p5, %p727_p4 }
  0x12   :  { %p730_p7 = pnand %p729_p6, %p723_p3 }
  0x14   :  { %733 = shalt.err (!%p730_p7)
}
  0x15   :  { %s924_s17 = smov 64   ;;  %s925_s18 = smov 4  }
  0x16   :  { %42 = dma.hbm_to_vmem [thread:$0]  %s1151_s1, 128, %s37_s28, [#allocation7], %s924_s17, %s924_s17, %s925_s18  }
  0x17   :  { %s734_s23 = scalar_lea.hbm %s1153_s3, 1024 }
  0x18   :  { %p735_p8 = scmp.ne.s32.totalorder %s1153_s3, %s734_s23  ;;  %p738_p9 = scmp.lt.u32.totalorder %s734_s23, %s1153_s3 }
  0x1a   :  { %p740_p10 = pnand %p738_p9, %p735_p8 }
  0x1c   :  { %743 = shalt.err (!%p740_p10)
}
  0x1d   :  { %s744_s29 = scalar_lea.vmem %s980_s30, 1024  ;;  %p749_p12 = scmp.lt.s32.totalorder %s980_s30, %s980_s30 }
  0x1e   :  { %p745_p11 = scmp.ne.s32.totalorder %s980_s30, %s744_s29  ;;  %p750_p13 = scmp.lt.s32.totalorder %s744_s29, %s744_s29 }
  0x20   :  { %p751_p0 = por %p750_p13, %p749_p12 }
  0x22   :  { %p752_p1 = pnand %p751_p0, %p745_p11 }
  0x24   :  { %755 = shalt.err (!%p752_p1)
}
  0x25   :  { %66 = dma.hbm_to_vmem [thread:$0]  %s1153_s3, 1024, %s980_s30, [#allocation10], %s924_s17, %s924_s17, %s925_s18  }
  0x26   :  { %s926_s9 = smov [#allocation12]   ;;  %s927_s11 = smov [#allocation3]  }
  0x27   :  { %s83_s10 = sshll.u32 %s926_s9, 4  ;;  %s24_s12 = sshll.u32 %s927_s11, 4  ;;  %s84_s10 = int_to_ptr.vmem [resolvable:$true] %s83_s10  ;;  %s1017_s12 = int_to_ptr.vmem [resolvable:$true] %s24_s12 }
  0x28   :  { %s756_s15 = scalar_lea.hbm %s1155_s5, 16 }
  0x29   :  { %p757_p2 = scmp.ne.s32.totalorder %s1155_s5, %s756_s15  ;;  %p760_p3 = scmp.lt.u32.totalorder %s756_s15, %s1155_s5 }
  0x2b   :  { %p762_p4 = pnand %p760_p3, %p757_p2 }
  0x2d   :  { %765 = shalt.err (!%p762_p4)
}
  0x2e   :  { %s766_s3 = scalar_lea.vmem %s84_s10, 16  ;;  %s770_s30 = scalar_lea.vmem %s84_s10, 32 }
  0x2f   :  { %p767_p5 = scmp.ne.s32.totalorder %s84_s10, %s766_s3  ;;  %p771_p6 = scmp.lt.s32.totalorder %s84_s10, %s84_s10 }
  0x30   :  { %p772_p7 = scmp.lt.s32.totalorder %s770_s30, %s766_s3 }
  0x32   :  { %p773_p8 = por %p772_p7, %p771_p6 }
  0x34   :  { %p774_p9 = pnand %p773_p8, %p767_p5 }
  0x36   :  { %777 = shalt.err (!%p774_p9)
}
  0x37   :  { %86 = dma.hbm_to_vmem [thread:$0]  %s1155_s5, 16, %s84_s10, [#allocation13]  }
  0x38   :  { %s778_s26 = scalar_lea.hbm %s1150_s0, 128 }
  0x39   :  { %p779_p10 = scmp.ne.s32.totalorder %s1150_s0, %s778_s26  ;;  %p782_p11 = scmp.lt.u32.totalorder %s778_s26, %s1150_s0 }
  0x3b   :  { %p784_p12 = pnand %p782_p11, %p779_p10 }
  0x3d   :  { %787 = shalt.err (!%p784_p12)
}
  0x3e   :  { %s788_s9 = scalar_lea.vmem %s1017_s12, 128  ;;  %p793_p0 = scmp.lt.s32.totalorder %s1017_s12, %s1017_s12 }
  0x3f   :  { %p789_p13 = scmp.ne.s32.totalorder %s1017_s12, %s788_s9  ;;  %p794_p1 = scmp.lt.s32.totalorder %s788_s9, %s788_s9 }
  0x41   :  { %p795_p2 = por %p794_p1, %p793_p0 }
  0x43   :  { %p796_p3 = pnand %p795_p2, %p789_p13 }
  0x45   :  { %799 = shalt.err (!%p796_p3)
}
  0x46   :  { %30 = dma.hbm_to_vmem [thread:$0]  %s1150_s0, 128, %s1017_s12, [#allocation4], %s924_s17, %s924_s17, %s925_s18  }
  0x47   :  { %s928_s11 = smov [#allocation8]   ;;  %s929_s14 = smov [#allocation11]  }
  0x48   :  { %s48_s13 = sshll.u32 %s928_s11, 4  ;;  %s73_s15 = sshll.u32 %s929_s14, 4  ;;  %s49_s13 = int_to_ptr.vmem [resolvable:$true] %s48_s13  ;;  %s74_s15 = int_to_ptr.vmem [resolvable:$true] %s73_s15 }
  0x49   :  { %s800_s20 = scalar_lea.hbm %s1152_s2, 1024 }
  0x4a   :  { %p801_p4 = scmp.ne.s32.totalorder %s1152_s2, %s800_s20  ;;  %p804_p5 = scmp.lt.u32.totalorder %s800_s20, %s1152_s2 }
  0x4c   :  { %p806_p6 = pnand %p804_p5, %p801_p4 }
  0x4e   :  { %809 = shalt.err (!%p806_p6)
}
  0x4f   :  { %s810_s0 = scalar_lea.vmem %s49_s13, 1024  ;;  %p815_p8 = scmp.lt.s32.totalorder %s49_s13, %s49_s13 }
  0x50   :  { %p811_p7 = scmp.ne.s32.totalorder %s49_s13, %s810_s0  ;;  %p816_p9 = scmp.lt.s32.totalorder %s810_s0, %s810_s0 }
  0x52   :  { %p817_p10 = por %p816_p9, %p815_p8 }
  0x54   :  { %p818_p11 = pnand %p817_p10, %p811_p7 }
  0x56   :  { %821 = shalt.err (!%p818_p11)
}
  0x57   :  { %54 = dma.hbm_to_vmem [thread:$0]  %s1152_s2, 1024, %s49_s13, [#allocation7], %s924_s17, %s924_s17, %s925_s18  }
  0x58   :  { %s822_s26 = scalar_lea.hbm %s1154_s4, 16 }
  0x59   :  { %p823_p12 = scmp.ne.s32.totalorder %s1154_s4, %s822_s26  ;;  %p826_p13 = scmp.lt.u32.totalorder %s822_s26, %s1154_s4 }
  0x5b   :  { %p828_p0 = pnand %p826_p13, %p823_p12 }
  0x5d   :  { %831 = shalt.err (!%p828_p0)
}
  0x5e   :  { %s832_s9 = scalar_lea.vmem %s74_s15, 16  ;;  %s836_s5 = scalar_lea.vmem %s74_s15, 32 }
  0x5f   :  { %p833_p1 = scmp.ne.s32.totalorder %s74_s15, %s832_s9  ;;  %p837_p2 = scmp.lt.s32.totalorder %s74_s15, %s74_s15 }
  0x60   :  { %p838_p3 = scmp.lt.s32.totalorder %s836_s5, %s832_s9 }
  0x62   :  { %p839_p4 = por %p838_p3, %p837_p2 }
  0x64   :  { %p840_p5 = pnand %p839_p4, %p833_p1 }
  0x66   :  { %843 = shalt.err (!%p840_p5)
}
  0x67   :  { %76 = dma.hbm_to_vmem [thread:$0]  %s1154_s4, 16, %s74_s15, [#allocation10]  }
  0x68   :  { %s930_s11 = smov [#allocation14]   ;;  %s931_s14 = smov [#allocation15]  }
  0x69   :  { %s92_s13 = sshll.u32 %s930_s11, 4  ;;  %s105_s16 = sshll.u32 %s931_s14, 4  ;;  %s93_s13 = int_to_ptr.vmem [resolvable:$true] %s92_s13  ;;  %s106_s16 = int_to_ptr.vmem [resolvable:$true] %s105_s16 }
  0x6a   :  { %s844_s21 = scalar_lea.hbm %s1156_s6, 1024 }
  0x6b   :  { %p845_p6 = scmp.ne.s32.totalorder %s1156_s6, %s844_s21  ;;  %p848_p7 = scmp.lt.u32.totalorder %s844_s21, %s1156_s6 }
  0x6d   :  { %p850_p8 = pnand %p848_p7, %p845_p6 }
  0x6f   :  { %853 = shalt.err (!%p850_p8)
}
  0x70   :  { %s854_s4 = scalar_lea.vmem %s93_s13, 1024  ;;  %p859_p10 = scmp.lt.s32.totalorder %s93_s13, %s93_s13 }
  0x71   :  { %p855_p9 = scmp.ne.s32.totalorder %s93_s13, %s854_s4  ;;  %p860_p11 = scmp.lt.s32.totalorder %s854_s4, %s854_s4 }
  0x73   :  { %p861_p12 = por %p860_p11, %p859_p10 }
  0x75   :  { %p862_p13 = pnand %p861_p12, %p855_p9 }
  0x77   :  { %865 = shalt.err (!%p862_p13)
}
  0x78   :  { %98 = dma.hbm_to_vmem [thread:$0]  %s1156_s6, 1024, %s93_s13, [#allocation13], %s924_s17, %s924_s17, %s925_s18  }
  0x79   :  { %s866_s25 = scalar_lea.hbm %s1157_s7, 16 }
  0x7a   :  { %p867_p0 = scmp.ne.s32.totalorder %s1157_s7, %s866_s25  ;;  %p870_p1 = scmp.lt.u32.totalorder %s866_s25, %s1157_s7 }
  0x7c   :  { %p872_p2 = pnand %p870_p1, %p867_p0 }
  0x7e   :  { %875 = shalt.err (!%p872_p2)
}
  0x7f   :  { %s876_s28 = scalar_lea.vmem %s106_s16, 16  ;;  %s880_s9 = scalar_lea.vmem %s106_s16, 32 }
  0x80   :  { %p877_p3 = scmp.ne.s32.totalorder %s106_s16, %s876_s28  ;;  %p881_p4 = scmp.lt.s32.totalorder %s106_s16, %s106_s16 }
  0x81   :  { %p882_p5 = scmp.lt.s32.totalorder %s880_s9, %s876_s28 }
  0x83   :  { %p883_p6 = por %p882_p5, %p881_p4 }
  0x85   :  { %p884_p7 = pnand %p883_p6, %p877_p3 }
  0x87   :  { %887 = shalt.err (!%p884_p7)
}
  0x88   :  { %108 = dma.hbm_to_vmem [thread:$0]  %s1157_s7, 16, %s106_s16, [#allocation16]  }
  0x89   :  { %910 = dma.done.wait [#allocation4], 128  }
  0x8a   :  { %911 = vsyncadd [#allocation4], 4294967168 }
  0x8b   :  { %912 = dma.done.wait [#allocation7], 1152  }
  0x8c   :  { %913 = vsyncadd [#allocation7], 4294966144 }
  0x8d   :  { %914 = dma.done.wait [#allocation10], 1040  }
  0x8e   :  { %915 = vsyncadd [#allocation10], 4294966256 }
  0x8f   :  { %916 = dma.done.wait [#allocation13], 1040  }
  0x90   :  { %917 = vsyncadd [#allocation13], 4294966256 }
  0x91   :  { %918 = dma.done.wait [#allocation16], 16  }
  0x92   :  { %919 = vsyncadd [#allocation16], 4294967280  ;;  %v932_v0 = vmov 0.0   ;;  %vm933_vm0 = vmmov 0   ;;  %v686_v1 = vld [vmem:[#allocation9] sm:$0xff]   ;;  %v688_v3 = vld [vmem:[#allocation9 + $0x8] sm:$0xff]  }
  0x93   :  { %613 = vmatprep.subr.bf16.mxu0 %v932_v0  ;;  %633 = vmatprep.subr.bf16.mxu1 %v932_v0  ;;  %v687_v2 = vld [vmem:[#allocation8] sm:$0xff]   ;;  %v689_v4 = vld [vmem:[#allocation8 + $0x8] sm:$0xff]   ;;  %v690_v5 = vld [vmem:[#allocation9 + $0x10] sm:$0xff]   ;;  %s934_s7 = smov [#allocation17]  }
  0x94   :  { %629 = vmatprep.mubr.msk.bf16.mxu0 %vm933_vm0, %v932_v0  ;;  %649 = vmatprep.mubr.msk.bf16.mxu1 %vm933_vm0, %v932_v0  ;;  %v691_v6 = vld [vmem:[#allocation8 + $0x10] sm:$0xff]   ;;  %v692_v7 = vld [vmem:[#allocation9 + $0x18] sm:$0xff]   ;;  %v694_v9 = vld [vmem:[#allocation9 + $0x20] sm:$0xff]   ;;  %s529_s2 = sshll.u32 %s934_s7, 4  ;;  %s530_s2 = int_to_ptr.vmem [resolvable:$true] %s529_s2 }
  0x95   :  { %614 = vmatpush3.bf16.msra.mxu0 %v686_v1  ;;  %634 = vmatpush3.bf16.msra.mxu1 %v687_v2  ;;  %v693_v8 = vld [vmem:[#allocation8 + $0x18] sm:$0xff]   ;;  %v695_v10 = vld [vmem:[#allocation8 + $0x20] sm:$0xff]   ;;  %v696_v11 = vld [vmem:[#allocation9 + $0x28] sm:$0xff]   ;;  %s888_s10 = scalar_lea.vmem %s530_s2, 128  ;;  %p893_p9 = scmp.lt.s32.totalorder %s530_s2, %s530_s2 }
  0x96   :  { %615 = vmatprep.subr.bf16.mxu0 %v932_v0  ;;  %635 = vmatprep.subr.bf16.mxu1 %v932_v0  ;;  %v697_v12 = vld [vmem:[#allocation8 + $0x28] sm:$0xff]   ;;  %v698_v13 = vld [vmem:[#allocation9 + $0x30] sm:$0xff]   ;;  %v700_v15 = vld [vmem:[#allocation9 + $0x38] sm:$0xff]   ;;  %p889_p8 = scmp.ne.s32.totalorder %s530_s2, %s888_s10  ;;  %p894_p10 = scmp.lt.s32.totalorder %s888_s10, %s888_s10 }
  0x97   :  { %v699_v14 = vld [vmem:[#allocation8 + $0x30] sm:$0xff]   ;;  %v701_v16 = vld [vmem:[#allocation8 + $0x38] sm:$0xff]   ;;  %v704_v19 = vld [vmem:[#allocation14] sm:$0xff]  }
  0x98   :  { %v702_v17 = vld [vmem:[#allocation6] sm:$0xff]   ;;  %v703_v18 = vld [vmem:[#allocation3] sm:$0xff]   ;;  %v708_v23 = vld [vmem:[#allocation14 + $0x20] sm:$0xff]   ;;  %p895_p11 = por %p894_p10, %p893_p9 }
  0x99   :  { %616 = vmatpush3.bf16.msra.mxu0 %v688_v3  ;;  %636 = vmatpush3.bf16.msra.mxu1 %v689_v4  ;;  %v705_v20 = vld [vmem:[#allocation14 + $0x8] sm:$0xff]   ;;  %v706_v21 = vld [vmem:[#allocation14 + $0x10] sm:$0xff]   ;;  %v707_v22 = vld [vmem:[#allocation14 + $0x18] sm:$0xff]  }
  0x9a   :  { %617 = vmatprep.subr.bf16.mxu0 %v932_v0  ;;  %637 = vmatprep.subr.bf16.mxu1 %v932_v0  ;;  %v709_v24 = vld [vmem:[#allocation14 + $0x28] sm:$0xff]   ;;  %v710_v25 = vld [vmem:[#allocation14 + $0x30] sm:$0xff]   ;;  %v711_v26 = vld [vmem:[#allocation14 + $0x38] sm:$0xff]   ;;  %p896_p12 = pnand %p895_p11, %p889_p8 }
  0x9b   :  { %v563_v29 = vld [vmem:[#allocation11] ss:$0 sm:$0xff]  ;;  %v564_v39 = vld [vmem:[#allocation12] ss:$0 sm:$0xff]  ;;  %v576_v45 = vld [vmem:[#allocation15] ss:$0 sm:$0xff] }
  0x9d   :  { %618 = vmatpush3.bf16.msra.mxu0 %v690_v5  ;;  %638 = vmatpush3.bf16.msra.mxu1 %v691_v6 }
  0x9e   :  { %619 = vmatprep.subr.bf16.mxu0 %v932_v0  ;;  %639 = vmatprep.subr.bf16.mxu1 %v932_v0 }
  0xa1   :  { %620 = vmatpush3.bf16.msra.mxu0 %v692_v7  ;;  %640 = vmatpush3.bf16.msra.mxu1 %v693_v8 }
  0xa2   :  { %621 = vmatprep.subr.bf16.mxu0 %v932_v0  ;;  %641 = vmatprep.subr.bf16.mxu1 %v932_v0 }
  0xa5   :  { %622 = vmatpush3.bf16.msra.mxu0 %v694_v9  ;;  %642 = vmatpush3.bf16.msra.mxu1 %v695_v10 }
  0xa6   :  { %623 = vmatprep.subr.bf16.mxu0 %v932_v0  ;;  %643 = vmatprep.subr.bf16.mxu1 %v932_v0 }
  0xa9   :  { %624 = vmatpush3.bf16.msra.mxu0 %v696_v11  ;;  %644 = vmatpush3.bf16.msra.mxu1 %v697_v12 }
  0xaa   :  { %625 = vmatprep.subr.bf16.mxu0 %v932_v0  ;;  %645 = vmatprep.subr.bf16.mxu1 %v932_v0 }
  0xad   :  { %626 = vmatpush3.bf16.msra.mxu0 %v698_v13  ;;  %646 = vmatpush3.bf16.msra.mxu1 %v699_v14 }
  0xae   :  { %627 = vmatprep.subr.bf16.mxu0 %v932_v0  ;;  %647 = vmatprep.subr.bf16.mxu1 %v932_v0 }
  0xb1   :  { %628 = vmatpush3.bf16.msra.mxu0 %v700_v15  ;;  %648 = vmatpush3.bf16.msra.mxu1 %v701_v16 }
  0xb2   :  { %653 = vmatprep.subr.bf16.mxu0 %v932_v0 }
  0xb4   :  { %630 = vmatmul.mubr.bf16.vlgmr.msra.gmra.mrb[0].mxu0 %v702_v17  ;;  %650 = vmatmul.mubr.bf16.vlgmr.msra.gmra.mrb[0].mxu1 %v703_v18 }
  0xb5   :  { %654 = vmatpush3.bf16.msra.mxu0 %v704_v19  ;;  %669 = vmatprep.mubr.msk.bf16.mxu0 %vm933_vm0, %v932_v0 }
  0xb6   :  { %655 = vmatprep.subr.bf16.mxu0 %v932_v0 }
  0xb9   :  { %656 = vmatpush3.bf16.msra.mxu0 %v705_v20 }
  0xba   :  { %657 = vmatprep.subr.bf16.mxu0 %v932_v0 }
  0xbd   :  { %658 = vmatpush3.bf16.msra.mxu0 %v706_v21 }
  0xbe   :  { %659 = vmatprep.subr.bf16.mxu0 %v932_v0 }
  0xc1   :  { %660 = vmatpush3.bf16.msra.mxu0 %v707_v22 }
  0xc2   :  { %661 = vmatprep.subr.bf16.mxu0 %v932_v0 }
  0xc5   :  { %662 = vmatpush3.bf16.msra.mxu0 %v708_v23 }
  0xc6   :  { %663 = vmatprep.subr.bf16.mxu0 %v932_v0 }
  0xc9   :  { %664 = vmatpush3.bf16.msra.mxu0 %v709_v24 }
  0xca   :  { %665 = vmatprep.subr.bf16.mxu0 %v932_v0 }
  0xcd   :  { %666 = vmatpush3.bf16.msra.mxu0 %v710_v25 }
  0xce   :  { %667 = vmatprep.subr.bf16.mxu0 %v932_v0 }
  0xd1   :  { %668 = vmatpush3.bf16.msra.mxu0 %v711_v26 }
 0x187   :  { %v264_v27 = vpop.f32.mrb[0].mxu0  ;;  %v359_v28 = vpop.f32.mrb[0].mxu1 }
 0x188   :  { %v631_v30 = vpop.f32.mrb[1].mxu0  ;;  %v360_v31 = vadd.f32 %v359_v28, %v264_v27  ;;  %v651_v32 = vpop.f32.mrb[1].mxu1 }
 0x189   :  { %v267_v33 = vpop.f32.mrb[2].mxu0  ;;  %v362_v34 = vpop.f32.mrb[2].mxu1 }
 0x18a   :  { %v632_v35 = vpop.f32.mrb[3].mxu0  ;;  %v373_v36 = vadd.f32 %v563_v29, %v360_v31  ;;  %v363_v37 = vadd.f32 %v362_v34, %v267_v33  ;;  %v652_v38 = vpop.f32.mrb[3].mxu1 }
 0x18c   :  { %v374_v40 = vadd.f32 %v563_v29, %v363_v37  ;;  %vm382_vm1 = vcmp.gt.f32.partialorder %v373_v36, %v564_v39  ;;  %v384_v41 = vmax.f32 %v373_v36, 0.0 }
 0x18e   :  { %vm383_vm2 = vcmp.gt.f32.partialorder %v374_v40, %v564_v39  ;;  %v385_v42 = vmax.f32 %v374_v40, 0.0 }
 0x18f   :  { %vm573_vm3 = vmpackc.low %vm383_vm2, %vm382_vm1 }
 0x190   :  { %v574_v43 = vpack.c.bf16 %v385_v42, %v384_v41 }
 0x192   :  { %670 = vmatmul.mubr.msk.bf16.vlgmr.msra.gmra.mrb[4].mxu0 %vm573_vm3, %v574_v43 }
 0x265   :  { %v489_v44 = vpop.f32.mrb[4].mxu0 }
 0x266   :  { %v671_v46 = vpop.f32.mrb[5].mxu0  ;;  %v512_v48 = vadd.f32 %v576_v45, %v489_v44 }
 0x267   :  { %v492_v47 = vpop.f32.mrb[6].mxu0 }
 0x268   :  { %v513_v49 = vadd.f32 %v576_v45, %v492_v47  ;;  %v672_v50 = vpop.f32.mrb[7].mxu0 }
 0x26a   :  { %v584_v51 = vpack.c.bf16 %v513_v49, %v512_v48 }
 0x26c   :  { %585 = vst [vmem:[#allocation17] sm:$0xff] %v584_v51  }
 0x26d   :  { %899 = shalt.err (!%p896_p12)
}
 0x26e   :  { %s900_s14 = scalar_lea.hbm %s1158_s8, 128 }
 0x26f   :  { %p901_p13 = scmp.ne.s32.totalorder %s1158_s8, %s900_s14  ;;  %p904_p0 = scmp.lt.u32.totalorder %s900_s14, %s1158_s8 }
 0x271   :  { %p906_p1 = pnand %p904_p0, %p901_p13 }
 0x273   :  { %909 = shalt.err (!%p906_p1)
}
 0x274   :  { %535 = dma.vmem_to_hbm [thread:$0]  %s530_s2, 128, %s1158_s8, [#allocation5], %s924_s17, %s924_s17, %s925_s18  }
 0x275   :  { %920 = dma.done.wait [#allocation5], 128  }
 0x276   :  { %921 = vsyncadd [#allocation5], 4294967168 }
 0x277   :  { %539 = vsyncpa [#allocation4], 1 }
 0x278   :  { %540 = vsyncpa [#allocation7], 1 }
 0x279   :  { %541 = vsyncpa [#allocation10], 1 }
 0x27a   :  { %542 = vsyncpa [#allocation13], 1 }
 0x27b   :  { %543 = vsyncpa [#allocation16], 1 }
 0x27c   :  { %544 = vsyncpa [#allocation5], 1 }

// kernel: _forward_impl.1
= control target key start
LH: loop header
LB: loop body
LE: loop exit
PB: predicated region body
PF: predicated region fallthrough
CT: control target
= control target key end

     0   :  { %13 = vsyncpa [#allocation4], 0  ;;  %s1150_s0 = inlined_call_operand.hbm [shape: bf16[16,128], index: 0, kind: input, shape index: {}]   ;;  %s1151_s1 = inlined_call_operand.hbm [shape: bf16[16,128], index: 1, kind: input, shape index: {}]   ;;  %s1152_s2 = inlined_call_operand.hbm [shape: bf16[128,128], index: 2, kind: input, shape index: {}]   ;;  %s1153_s3 = inlined_call_operand.hbm [shape: bf16[128,128], index: 3, kind: input, shape index: {}]   ;;  %s1154_s4 = inlined_call_operand.hbm [shape: f32[1,128], index: 4, kind: input, shape index: {}]   ;;  %s1155_s5 = inlined_call_operand.hbm [shape: f32[1,128], index: 5, kind: input, shape index: {}]   ;;  %s1156_s6 = inlined_call_operand.hbm [shape: bf16[128,128], index: 6, kind: input, shape index: {}]   ;;  %s1157_s7 = inlined_call_operand.hbm [shape: f32[1,128], index: 7, kind: input, shape index: {}]   ;;  %s1158_s8 = inlined_call_operand.hbm [shape: bf16[16,128], index: 8, kind: output, shape index: {}]  }
   0x1   :  { %14 = vsyncpa [#allocation7], 0 }
   0x2   :  { %15 = vsyncpa [#allocation10], 0 }
   0x3   :  { %16 = vsyncpa [#allocation13], 0 }
   0x4   :  { %17 = vsyncpa [#allocation16], 0 }
   0x5   :  { %18 = vsyncpa [#allocation5], 0  ;;  %s922_s27 = smov [#allocation6]   ;;  %s923_s29 = smov [#allocation9]  }
   0x6   :  { %s36_s28 = sshll.u32 %s922_s27, 4  ;;  %s60_s30 = sshll.u32 %s923_s29, 4  ;;  %s37_s28 = int_to_ptr.vmem [resolvable:$true] %s36_s28  ;;  %s980_s30 = int_to_ptr.vmem [resolvable:$true] %s60_s30 }
   0x7   :  { %s712_s11 = scalar_lea.hbm %s1151_s1, 128 }
   0x8   :  { %p713_p0 = scmp.ne.s32.totalorder %s1151_s1, %s712_s11  ;;  %p716_p1 = scmp.lt.u32.totalorder %s712_s11, %s1151_s1 }
   0xa   :  { %p718_p2 = pnand %p716_p1, %p713_p0 }
   0xc   :  { %721 = shalt.err (!%p718_p2)
}
   0xd   :  { %s722_s16 = scalar_lea.vmem %s37_s28, 128  ;;  %p727_p4 = scmp.lt.s32.totalorder %s37_s28, %s37_s28 }
   0xe   :  { %p723_p3 = scmp.ne.s32.totalorder %s37_s28, %s722_s16  ;;  %p728_p5 = scmp.lt.s32.totalorder %s722_s16, %s722_s16 }
  0x10   :  { %p729_p6 = por %p728_p5, %p727_p4 }
  0x12   :  { %p730_p7 = pnand %p729_p6, %p723_p3 }
  0x14   :  { %733 = shalt.err (!%p730_p7)
}
  0x15   :  { %s924_s17 = smov 64   ;;  %s925_s18 = smov 4  }
  0x16   :  { %42 = dma.hbm_to_vmem [thread:$0]  %s1151_s1, 128, %s37_s28, [#allocation7], %s924_s17, %s924_s17, %s925_s18  }
  0x17   :  { %s734_s23 = scalar_lea.hbm %s1153_s3, 1024 }
  0x18   :  { %p735_p8 = scmp.ne.s32.totalorder %s1153_s3, %s734_s23  ;;  %p738_p9 = scmp.lt.u32.totalorder %s734_s23, %s1153_s3 }
  0x1a   :  { %p740_p10 = pnand %p738_p9, %p735_p8 }
  0x1c   :  { %743 = shalt.err (!%p740_p10)
}
  0x1d   :  { %s744_s29 = scalar_lea.vmem %s980_s30, 1024  ;;  %p749_p12 = scmp.lt.s32.totalorder %s980_s30, %s980_s30 }
  0x1e   :  { %p745_p11 = scmp.ne.s32.totalorder %s980_s30, %s744_s29  ;;  %p750_p13 = scmp.lt.s32.totalorder %s744_s29, %s744_s29 }
  0x20   :  { %p751_p0 = por %p750_p13, %p749_p12 }
  0x22   :  { %p752_p1 = pnand %p751_p0, %p745_p11 }
  0x24   :  { %755 = shalt.err (!%p752_p1)
}
  0x25   :  { %66 = dma.hbm_to_vmem [thread:$0]  %s1153_s3, 1024, %s980_s30, [#allocation10], %s924_s17, %s924_s17, %s925_s18  }
  0x26   :  { %s926_s9 = smov [#allocation12]   ;;  %s927_s11 = smov [#allocation3]  }
  0x27   :  { %s83_s10 = sshll.u32 %s926_s9, 4  ;;  %s24_s12 = sshll.u32 %s927_s11, 4  ;;  %s84_s10 = int_to_ptr.vmem [resolvable:$true] %s83_s10  ;;  %s1017_s12 = int_to_ptr.vmem [resolvable:$true] %s24_s12 }
  0x28   :  { %s756_s15 = scalar_lea.hbm %s1155_s5, 16 }
  0x29   :  { %p757_p2 = scmp.ne.s32.totalorder %s1155_s5, %s756_s15  ;;  %p760_p3 = scmp.lt.u32.totalorder %s756_s15, %s1155_s5 }
  0x2b   :  { %p762_p4 = pnand %p760_p3, %p757_p2 }
  0x2d   :  { %765 = shalt.err (!%p762_p4)
}
  0x2e   :  { %s766_s3 = scalar_lea.vmem %s84_s10, 16  ;;  %s770_s30 = scalar_lea.vmem %s84_s10, 32 }
  0x2f   :  { %p767_p5 = scmp.ne.s32.totalorder %s84_s10, %s766_s3  ;;  %p771_p6 = scmp.lt.s32.totalorder %s84_s10, %s84_s10 }
  0x30   :  { %p772_p7 = scmp.lt.s32.totalorder %s770_s30, %s766_s3 }
  0x32   :  { %p773_p8 = por %p772_p7, %p771_p6 }
  0x34   :  { %p774_p9 = pnand %p773_p8, %p767_p5 }
  0x36   :  { %777 = shalt.err (!%p774_p9)
}
  0x37   :  { %86 = dma.hbm_to_vmem [thread:$0]  %s1155_s5, 16, %s84_s10, [#allocation13]  }
  0x38   :  { %s778_s26 = scalar_lea.hbm %s1150_s0, 128 }
  0x39   :  { %p779_p10 = scmp.ne.s32.totalorder %s1150_s0, %s778_s26  ;;  %p782_p11 = scmp.lt.u32.totalorder %s778_s26, %s1150_s0 }
  0x3b   :  { %p784_p12 = pnand %p782_p11, %p779_p10 }
  0x3d   :  { %787 = shalt.err (!%p784_p12)
}
  0x3e   :  { %s788_s9 = scalar_lea.vmem %s1017_s12, 128  ;;  %p793_p0 = scmp.lt.s32.totalorder %s1017_s12, %s1017_s12 }
  0x3f   :  { %p789_p13 = scmp.ne.s32.totalorder %s1017_s12, %s788_s9  ;;  %p794_p1 = scmp.lt.s32.totalorder %s788_s9, %s788_s9 }
  0x41   :  { %p795_p2 = por %p794_p1, %p793_p0 }
  0x43   :  { %p796_p3 = pnand %p795_p2, %p789_p13 }
  0x45   :  { %799 = shalt.err (!%p796_p3)
}
  0x46   :  { %30 = dma.hbm_to_vmem [thread:$0]  %s1150_s0, 128, %s1017_s12, [#allocation4], %s924_s17, %s924_s17, %s925_s18  }
  0x47   :  { %s928_s11 = smov [#allocation8]   ;;  %s929_s14 = smov [#allocation11]  }
  0x48   :  { %s48_s13 = sshll.u32 %s928_s11, 4  ;;  %s73_s15 = sshll.u32 %s929_s14, 4  ;;  %s49_s13 = int_to_ptr.vmem [resolvable:$true] %s48_s13  ;;  %s74_s15 = int_to_ptr.vmem [resolvable:$true] %s73_s15 }
  0x49   :  { %s800_s20 = scalar_lea.hbm %s1152_s2, 1024 }
  0x4a   :  { %p801_p4 = scmp.ne.s32.totalorder %s1152_s2, %s800_s20  ;;  %p804_p5 = scmp.lt.u32.totalorder %s800_s20, %s1152_s2 }
  0x4c   :  { %p806_p6 = pnand %p804_p5, %p801_p4 }
  0x4e   :  { %809 = shalt.err (!%p806_p6)
}
  0x4f   :  { %s810_s0 = scalar_lea.vmem %s49_s13, 1024  ;;  %p815_p8 = scmp.lt.s32.totalorder %s49_s13, %s49_s13 }
  0x50   :  { %p811_p7 = scmp.ne.s32.totalorder %s49_s13, %s810_s0  ;;  %p816_p9 = scmp.lt.s32.totalorder %s810_s0, %s810_s0 }
  0x52   :  { %p817_p10 = por %p816_p9, %p815_p8 }
  0x54   :  { %p818_p11 = pnand %p817_p10, %p811_p7 }
  0x56   :  { %821 = shalt.err (!%p818_p11)
}
  0x57   :  { %54 = dma.hbm_to_vmem [thread:$0]  %s1152_s2, 1024, %s49_s13, [#allocation7], %s924_s17, %s924_s17, %s925_s18  }
  0x58   :  { %s822_s26 = scalar_lea.hbm %s1154_s4, 16 }
  0x59   :  { %p823_p12 = scmp.ne.s32.totalorder %s1154_s4, %s822_s26  ;;  %p826_p13 = scmp.lt.u32.totalorder %s822_s26, %s1154_s4 }
  0x5b   :  { %p828_p0 = pnand %p826_p13, %p823_p12 }
  0x5d   :  { %831 = shalt.err (!%p828_p0)
}
  0x5e   :  { %s832_s9 = scalar_lea.vmem %s74_s15, 16  ;;  %s836_s5 = scalar_lea.vmem %s74_s15, 32 }
  0x5f   :  { %p833_p1 = scmp.ne.s32.totalorder %s74_s15, %s832_s9  ;;  %p837_p2 = scmp.lt.s32.totalorder %s74_s15, %s74_s15 }
  0x60   :  { %p838_p3 = scmp.lt.s32.totalorder %s836_s5, %s832_s9 }
  0x62   :  { %p839_p4 = por %p838_p3, %p837_p2 }
  0x64   :  { %p840_p5 = pnand %p839_p4, %p833_p1 }
  0x66   :  { %843 = shalt.err (!%p840_p5)
}
  0x67   :  { %76 = dma.hbm_to_vmem [thread:$0]  %s1154_s4, 16, %s74_s15, [#allocation10]  }
  0x68   :  { %s930_s11 = smov [#allocation14]   ;;  %s931_s14 = smov [#allocation15]  }
  0x69   :  { %s92_s13 = sshll.u32 %s930_s11, 4  ;;  %s105_s16 = sshll.u32 %s931_s14, 4  ;;  %s93_s13 = int_to_ptr.vmem [resolvable:$true] %s92_s13  ;;  %s106_s16 = int_to_ptr.vmem [resolvable:$true] %s105_s16 }
  0x6a   :  { %s844_s21 = scalar_lea.hbm %s1156_s6, 1024 }
  0x6b   :  { %p845_p6 = scmp.ne.s32.totalorder %s1156_s6, %s844_s21  ;;  %p848_p7 = scmp.lt.u32.totalorder %s844_s21, %s1156_s6 }
  0x6d   :  { %p850_p8 = pnand %p848_p7, %p845_p6 }
  0x6f   :  { %853 = shalt.err (!%p850_p8)
}
  0x70   :  { %s854_s4 = scalar_lea.vmem %s93_s13, 1024  ;;  %p859_p10 = scmp.lt.s32.totalorder %s93_s13, %s93_s13 }
  0x71   :  { %p855_p9 = scmp.ne.s32.totalorder %s93_s13, %s854_s4  ;;  %p860_p11 = scmp.lt.s32.totalorder %s854_s4, %s854_s4 }
  0x73   :  { %p861_p12 = por %p860_p11, %p859_p10 }
  0x75   :  { %p862_p13 = pnand %p861_p12, %p855_p9 }
  0x77   :  { %865 = shalt.err (!%p862_p13)
}
  0x78   :  { %98 = dma.hbm_to_vmem [thread:$0]  %s1156_s6, 1024, %s93_s13, [#allocation13], %s924_s17, %s924_s17, %s925_s18  }
  0x79   :  { %s866_s25 = scalar_lea.hbm %s1157_s7, 16 }
  0x7a   :  { %p867_p0 = scmp.ne.s32.totalorder %s1157_s7, %s866_s25  ;;  %p870_p1 = scmp.lt.u32.totalorder %s866_s25, %s1157_s7 }
  0x7c   :  { %p872_p2 = pnand %p870_p1, %p867_p0 }
  0x7e   :  { %875 = shalt.err (!%p872_p2)
}
  0x7f   :  { %s876_s28 = scalar_lea.vmem %s106_s16, 16  ;;  %s880_s9 = scalar_lea.vmem %s106_s16, 32 }
  0x80   :  { %p877_p3 = scmp.ne.s32.totalorder %s106_s16, %s876_s28  ;;  %p881_p4 = scmp.lt.s32.totalorder %s106_s16, %s106_s16 }
  0x81   :  { %p882_p5 = scmp.lt.s32.totalorder %s880_s9, %s876_s28 }
  0x83   :  { %p883_p6 = por %p882_p5, %p881_p4 }
  0x85   :  { %p884_p7 = pnand %p883_p6, %p877_p3 }
  0x87   :  { %887 = shalt.err (!%p884_p7)
}
  0x88   :  { %108 = dma.hbm_to_vmem [thread:$0]  %s1157_s7, 16, %s106_s16, [#allocation16]  }
  0x89   :  { %910 = dma.done.wait [#allocation4], 128  }
  0x8a   :  { %911 = vsyncadd [#allocation4], 4294967168 }
  0x8b   :  { %912 = dma.done.wait [#allocation7], 1152  }
  0x8c   :  { %913 = vsyncadd [#allocation7], 4294966144 }
  0x8d   :  { %914 = dma.done.wait [#allocation10], 1040  }
  0x8e   :  { %915 = vsyncadd [#allocation10], 4294966256 }
  0x8f   :  { %916 = dma.done.wait [#allocation13], 1040  }
  0x90   :  { %917 = vsyncadd [#allocation13], 4294966256 }
  0x91   :  { %918 = dma.done.wait [#allocation16], 16  }
  0x92   :  { %919 = vsyncadd [#allocation16], 4294967280  ;;  %v932_v0 = vmov 0.0   ;;  %vm933_vm0 = vmmov 0   ;;  %v686_v1 = vld [vmem:[#allocation9] sm:$0xff]   ;;  %v688_v3 = vld [vmem:[#allocation9 + $0x8] sm:$0xff]  }
  0x93   :  { %613 = vmatprep.subr.bf16.mxu0 %v932_v0  ;;  %633 = vmatprep.subr.bf16.mxu1 %v932_v0  ;;  %v687_v2 = vld [vmem:[#allocation8] sm:$0xff]   ;;  %v689_v4 = vld [vmem:[#allocation8 + $0x8] sm:$0xff]   ;;  %v690_v5 = vld [vmem:[#allocation9 + $0x10] sm:$0xff]   ;;  %s934_s7 = smov [#allocation17]  }
  0x94   :  { %629 = vmatprep.mubr.msk.bf16.mxu0 %vm933_vm0, %v932_v0  ;;  %649 = vmatprep.mubr.msk.bf16.mxu1 %vm933_vm0, %v932_v0  ;;  %v691_v6 = vld [vmem:[#allocation8 + $0x10] sm:$0xff]   ;;  %v692_v7 = vld [vmem:[#allocation9 + $0x18] sm:$0xff]   ;;  %v694_v9 = vld [vmem:[#allocation9 + $0x20] sm:$0xff]   ;;  %s529_s2 = sshll.u32 %s934_s7, 4  ;;  %s530_s2 = int_to_ptr.vmem [resolvable:$true] %s529_s2 }
  0x95   :  { %614 = vmatpush3.bf16.msra.mxu0 %v686_v1  ;;  %634 = vmatpush3.bf16.msra.mxu1 %v687_v2  ;;  %v693_v8 = vld [vmem:[#allocation8 + $0x18] sm:$0xff]   ;;  %v695_v10 = vld [vmem:[#allocation8 + $0x20] sm:$0xff]   ;;  %v696_v11 = vld [vmem:[#allocation9 + $0x28] sm:$0xff]   ;;  %s888_s10 = scalar_lea.vmem %s530_s2, 128  ;;  %p893_p9 = scmp.lt.s32.totalorder %s530_s2, %s530_s2 }
  0x96   :  { %615 = vmatprep.subr.bf16.mxu0 %v932_v0  ;;  %635 = vmatprep.subr.bf16.mxu1 %v932_v0  ;;  %v697_v12 = vld [vmem:[#allocation8 + $0x28] sm:$0xff]   ;;  %v698_v13 = vld [vmem:[#allocation9 + $0x30] sm:$0xff]   ;;  %v700_v15 = vld [vmem:[#allocation9 + $0x38] sm:$0xff]   ;;  %p889_p8 = scmp.ne.s32.totalorder %s530_s2, %s888_s10  ;;  %p894_p10 = scmp.lt.s32.totalorder %s888_s10, %s888_s10 }
  0x97   :  { %v699_v14 = vld [vmem:[#allocation8 + $0x30] sm:$0xff]   ;;  %v701_v16 = vld [vmem:[#allocation8 + $0x38] sm:$0xff]   ;;  %v704_v19 = vld [vmem:[#allocation14] sm:$0xff]  }
  0x98   :  { %v702_v17 = vld [vmem:[#allocation6] sm:$0xff]   ;;  %v703_v18 = vld [vmem:[#allocation3] sm:$0xff]   ;;  %v708_v23 = vld [vmem:[#allocation14 + $0x20] sm:$0xff]   ;;  %p895_p11 = por %p894_p10, %p893_p9 }
  0x99   :  { %616 = vmatpush3.bf16.msra.mxu0 %v688_v3  ;;  %636 = vmatpush3.bf16.msra.mxu1 %v689_v4  ;;  %v705_v20 = vld [vmem:[#allocation14 + $0x8] sm:$0xff]   ;;  %v706_v21 = vld [vmem:[#allocation14 + $0x10] sm:$0xff]   ;;  %v707_v22 = vld [vmem:[#allocation14 + $0x18] sm:$0xff]  }
  0x9a   :  { %617 = vmatprep.subr.bf16.mxu0 %v932_v0  ;;  %637 = vmatprep.subr.bf16.mxu1 %v932_v0  ;;  %v709_v24 = vld [vmem:[#allocation14 + $0x28] sm:$0xff]   ;;  %v710_v25 = vld [vmem:[#allocation14 + $0x30] sm:$0xff]   ;;  %v711_v26 = vld [vmem:[#allocation14 + $0x38] sm:$0xff]   ;;  %p896_p12 = pnand %p895_p11, %p889_p8 }
  0x9b   :  { %v563_v29 = vld [vmem:[#allocation11] ss:$0 sm:$0xff]  ;;  %v564_v39 = vld [vmem:[#allocation12] ss:$0 sm:$0xff]  ;;  %v576_v45 = vld [vmem:[#allocation15] ss:$0 sm:$0xff] }
  0x9d   :  { %618 = vmatpush3.bf16.msra.mxu0 %v690_v5  ;;  %638 = vmatpush3.bf16.msra.mxu1 %v691_v6 }
  0x9e   :  { %619 = vmatprep.subr.bf16.mxu0 %v932_v0  ;;  %639 = vmatprep.subr.bf16.mxu1 %v932_v0 }
  0xa1   :  { %620 = vmatpush3.bf16.msra.mxu0 %v692_v7  ;;  %640 = vmatpush3.bf16.msra.mxu1 %v693_v8 }
  0xa2   :  { %621 = vmatprep.subr.bf16.mxu0 %v932_v0  ;;  %641 = vmatprep.subr.bf16.mxu1 %v932_v0 }
  0xa5   :  { %622 = vmatpush3.bf16.msra.mxu0 %v694_v9  ;;  %642 = vmatpush3.bf16.msra.mxu1 %v695_v10 }
  0xa6   :  { %623 = vmatprep.subr.bf16.mxu0 %v932_v0  ;;  %643 = vmatprep.subr.bf16.mxu1 %v932_v0 }
  0xa9   :  { %624 = vmatpush3.bf16.msra.mxu0 %v696_v11  ;;  %644 = vmatpush3.bf16.msra.mxu1 %v697_v12 }
  0xaa   :  { %625 = vmatprep.subr.bf16.mxu0 %v932_v0  ;;  %645 = vmatprep.subr.bf16.mxu1 %v932_v0 }
  0xad   :  { %626 = vmatpush3.bf16.msra.mxu0 %v698_v13  ;;  %646 = vmatpush3.bf16.msra.mxu1 %v699_v14 }
  0xae   :  { %627 = vmatprep.subr.bf16.mxu0 %v932_v0  ;;  %647 = vmatprep.subr.bf16.mxu1 %v932_v0 }
  0xb1   :  { %628 = vmatpush3.bf16.msra.mxu0 %v700_v15  ;;  %648 = vmatpush3.bf16.msra.mxu1 %v701_v16 }
  0xb2   :  { %653 = vmatprep.subr.bf16.mxu0 %v932_v0 }
  0xb4   :  { %630 = vmatmul.mubr.bf16.vlgmr.msra.gmra.mrb[0].mxu0 %v702_v17  ;;  %650 = vmatmul.mubr.bf16.vlgmr.msra.gmra.mrb[0].mxu1 %v703_v18 }
  0xb5   :  { %654 = vmatpush3.bf16.msra.mxu0 %v704_v19  ;;  %669 = vmatprep.mubr.msk.bf16.mxu0 %vm933_vm0, %v932_v0 }
  0xb6   :  { %655 = vmatprep.subr.bf16.mxu0 %v932_v0 }
  0xb9   :  { %656 = vmatpush3.bf16.msra.mxu0 %v705_v20 }
  0xba   :  { %657 = vmatprep.subr.bf16.mxu0 %v932_v0 }
  0xbd   :  { %658 = vmatpush3.bf16.msra.mxu0 %v706_v21 }
  0xbe   :  { %659 = vmatprep.subr.bf16.mxu0 %v932_v0 }
  0xc1   :  { %660 = vmatpush3.bf16.msra.mxu0 %v707_v22 }
  0xc2   :  { %661 = vmatprep.subr.bf16.mxu0 %v932_v0 }
  0xc5   :  { %662 = vmatpush3.bf16.msra.mxu0 %v708_v23 }
  0xc6   :  { %663 = vmatprep.subr.bf16.mxu0 %v932_v0 }
  0xc9   :  { %664 = vmatpush3.bf16.msra.mxu0 %v709_v24 }
  0xca   :  { %665 = vmatprep.subr.bf16.mxu0 %v932_v0 }
  0xcd   :  { %666 = vmatpush3.bf16.msra.mxu0 %v710_v25 }
  0xce   :  { %667 = vmatprep.subr.bf16.mxu0 %v932_v0 }
  0xd1   :  { %668 = vmatpush3.bf16.msra.mxu0 %v711_v26 }
 0x187   :  { %v264_v27 = vpop.f32.mrb[0].mxu0  ;;  %v359_v28 = vpop.f32.mrb[0].mxu1 }
 0x188   :  { %v631_v30 = vpop.f32.mrb[1].mxu0  ;;  %v360_v31 = vadd.f32 %v359_v28, %v264_v27  ;;  %v651_v32 = vpop.f32.mrb[1].mxu1 }
 0x189   :  { %v267_v33 = vpop.f32.mrb[2].mxu0  ;;  %v362_v34 = vpop.f32.mrb[2].mxu1 }
 0x18a   :  { %v632_v35 = vpop.f32.mrb[3].mxu0  ;;  %v373_v36 = vadd.f32 %v563_v29, %v360_v31  ;;  %v363_v37 = vadd.f32 %v362_v34, %v267_v33  ;;  %v652_v38 = vpop.f32.mrb[3].mxu1 }
 0x18c   :  { %v374_v40 = vadd.f32 %v563_v29, %v363_v37  ;;  %vm382_vm1 = vcmp.gt.f32.partialorder %v373_v36, %v564_v39  ;;  %v384_v41 = vmax.f32 %v373_v36, 0.0 }
 0x18e   :  { %vm383_vm2 = vcmp.gt.f32.partialorder %v374_v40, %v564_v39  ;;  %v385_v42 = vmax.f32 %v374_v40, 0.0 }
 0x18f   :  { %vm573_vm3 = vmpackc.low %vm383_vm2, %vm382_vm1 }
 0x190   :  { %v574_v43 = vpack.c.bf16 %v385_v42, %v384_v41 }
 0x192   :  { %670 = vmatmul.mubr.msk.bf16.vlgmr.msra.gmra.mrb[4].mxu0 %vm573_vm3, %v574_v43 }
 0x265   :  { %v489_v44 = vpop.f32.mrb[4].mxu0 }
 0x266   :  { %v671_v46 = vpop.f32.mrb[5].mxu0  ;;  %v512_v48 = vadd.f32 %v576_v45, %v489_v44 }
 0x267   :  { %v492_v47 = vpop.f32.mrb[6].mxu0 }
 0x268   :  { %v513_v49 = vadd.f32 %v576_v45, %v492_v47  ;;  %v672_v50 = vpop.f32.mrb[7].mxu0 }
 0x26a   :  { %v584_v51 = vpack.c.bf16 %v513_v49, %v512_v48 }
 0x26c   :  { %585 = vst [vmem:[#allocation17] sm:$0xff] %v584_v51  }
 0x26d   :  { %899 = shalt.err (!%p896_p12)
}
 0x26e   :  { %s900_s14 = scalar_lea.hbm %s1158_s8, 128 }
 0x26f   :  { %p901_p13 = scmp.ne.s32.totalorder %s1158_s8, %s900_s14  ;;  %p904_p0 = scmp.lt.u32.totalorder %s900_s14, %s1158_s8 }
 0x271   :  { %p906_p1 = pnand %p904_p0, %p901_p13 }
 0x273   :  { %909 = shalt.err (!%p906_p1)
}
 0x274   :  { %535 = dma.vmem_to_hbm [thread:$0]  %s530_s2, 128, %s1158_s8, [#allocation5], %s924_s17, %s924_s17, %s925_s18  }
 0x275   :  { %920 = dma.done.wait [#allocation5], 128  }
 0x276   :  { %921 = vsyncadd [#allocation5], 4294967168 }
 0x277   :  { %539 = vsyncpa [#allocation4], 1 }
 0x278   :  { %540 = vsyncpa [#allocation7], 1 }
 0x279   :  { %541 = vsyncpa [#allocation10], 1 }
 0x27a   :  { %542 = vsyncpa [#allocation13], 1 }
 0x27b   :  { %543 = vsyncpa [#allocation16], 1 }
 0x27c   :  { %544 = vsyncpa [#allocation5], 1 }

</bundles_post_ra>
